<compile_context>
chip_gen: v5e
topology: v5e:2x2
jax: 0.10.0
libtpu: 0.0.40
codegen_flags: <defaults>
</compile_context>

<pallas_src>
import jax
import jax.numpy as jnp
from jax import lax
from jax.experimental import pallas as pl
from jax.experimental.pallas import tpu as pltpu


def mlp_kernel(x_ref, w1T_ref, b1_ref, w2_ref, b2_ref, o_ref):
    """One batch tile: x (TB, F) native layout -> lane-dense (1, TB) output."""
    # Layer 1 on the MXU, contracting F (last dim of BOTH operands) so no
    # transpose of x is needed anywhere and the result lands batch-on-lanes:
    #   (H, F) . (TB, F)^T -> (H, TB), f32 accumulation.
    h = lax.dot_general(
        w1T_ref[...], x_ref[...],
        dimension_numbers=(((1,), (1,)), ((), ())),
        preferred_element_type=jnp.float32)
    # Bias + ReLU in f32 on the VPU (b1 is an (H, 1) column, lane-broadcast).
    h = jnp.maximum(h + b1_ref[...], 0.0)
    # Layer 2 has output width 1 -> keep it off the MXU: broadcast multiply
    # (VPU) + sublane reduce (XLU) gives a lane-dense (1, TB) row directly.
    out = jnp.sum(h * w2_ref[...], axis=0, keepdims=True) + b2_ref[0, 0]
    o_ref[...] = out.astype(o_ref.dtype)


def _pick_batch_tile(B, F, itemsize):
    """Largest lane tile (multiple of 128, <=16384) whose double-buffered x
    stream plus the (H, tb) f32 layer-1 intermediates stay comfortably inside
    scoped VMEM on v5e/v6e/v7x, while keeping >= 2 grid steps for v7x's TCs."""
    if B <= 4096:
        return B                                  # single block == full dims
    budget = 8 * 1024 * 1024                      # x-tile budget (2 buffers)
    tb = budget // max(1, 2 * F * itemsize)
    tb = max(128, min(16384, (tb // 128) * 128))
    # Guarantee nb >= 2 so the "parallel" grid axis feeds both v7x TensorCores.
    half = ((pl.cdiv(B, 2) + 127) // 128) * 128
    return min(tb, half)


def simple_model_old(x, w1, b1, w2, b2):
    """x: (B, F); w1: (F, H); b1: (H,); w2: (H, 1); b2: (1,). Returns (B, 1)."""
    B, F = x.shape
    H = w1.shape[1]
    out_dtype = x.dtype

    # Parameter plumbing only (a few KiB) — x itself is read in its native
    # (B, F) layout with no wrapper-side transpose / astype / pad pass.
    w1T = jnp.asarray(w1).astype(x.dtype).T              # (H, F) MXU operand
    b1c = jnp.asarray(b1, jnp.float32).reshape(H, 1)     # (H, 1) column
    w2c = jnp.asarray(w2, jnp.float32).reshape(H, 1)     # (H, 1) column
    b2s = jnp.asarray(b2, jnp.float32).reshape(1, 1)     # (1, 1) true scalar

    tb = _pick_batch_tile(B, F, jnp.dtype(x.dtype).itemsize)
    nb = pl.cdiv(B, tb)                                  # partial last block OK

    outT = pl.pallas_call(
        mlp_kernel,
        out_shape=jax.ShapeDtypeStruct((1, B), out_dtype),
        grid=(nb,),
        in_specs=[
            # Streamed batch tile, native layout (double-buffered pipeline).
            pl.BlockSpec((tb, F), lambda i: (i, 0)),
            # Weights / bias: constant block index -> stay resident in VMEM.
            pl.BlockSpec((H, F), lambda i: (0, 0)),
            pl.BlockSpec((H, 1), lambda i: (0, 0)),
            pl.BlockSpec((H, 1), lambda i: (0, 0)),
            # Scalar output bias lives in SMEM (no per-step vector DMA).
            pl.BlockSpec(memory_space=pltpu.MemorySpace.SMEM),
        ],
        out_specs=pl.BlockSpec((1, tb), lambda i: (0, i)),
        compiler_params=pltpu.CompilerParams(
            dimension_semantics=("parallel",),           # both TCs on v7x
            # Big tiles need more than v5e's 16 MiB scoped default; stays well
            # under v7x's 64 MiB physical VMEM.
            vmem_limit_bytes=40 * 1024 * 1024),
    )(x, w1T, b1c, w2c, b2s)

    return outT.T                                        # lane-dense -> (B, 1)


if __name__ == "__main__":
    # Shapes consistent with the module: num_features=32, hidden=64, out=1.
    B, F, H, O = 8, 32, 64, 1

    key = jax.random.PRNGKey(0)
    k_x, k_w1, k_b1, k_w2, k_b2 = jax.random.split(key, 5)

    # Deterministic init, PyTorch-Linear-like uniform bounds (1/sqrt(fan_in)).
    bound1 = 1.0 / jnp.sqrt(F)
    bound2 = 1.0 / jnp.sqrt(H)
    w1 = jax.random.uniform(k_w1, (F, H), jnp.float32, -bound1, bound1)
    b1 = jax.random.uniform(k_b1, (H,), jnp.float32, -bound1, bound1)
    w2 = jax.random.uniform(k_w2, (H, O), jnp.float32, -bound2, bound2)
    b2 = jax.random.uniform(k_b2, (O,), jnp.float32, -bound2, bound2)

    def ref(xx):
        xf = xx.astype(jnp.float32)
        return jnp.maximum(xf @ w1 + b1[None, :], 0.0) @ w2 + b2[None, :]

    # Small shape (single-block path), tight f32 check.
    x_small = jax.random.normal(k_x, (B, F), dtype=jnp.float32)
    out_small = jax.block_until_ready(simple_model_old(x_small, w1, b1, w2, b2))
    assert out_small.shape == (B, O)
    assert jnp.allclose(out_small, ref(x_small), atol=1e-5, rtol=1e-5)

    # Larger, non-tile-aligned batch exercises the multi-step pipelined grid
    # with a partial last block (no wrapper-side transpose / astype / pad).
    B_big = 2 * 16384 + 40
    x_big = jax.random.normal(jax.random.PRNGKey(1), (B_big, F), jnp.float32)
    out_f32 = jax.block_until_ready(simple_model_old(x_big, w1, b1, w2, b2))
    assert out_f32.shape == (B_big, O)
    assert jnp.allclose(out_f32, ref(x_big), atol=1e-5, rtol=1e-5)

    # bf16 x arriving from upstream halves the dominant HBM stream; MXU takes
    # bf16 with f32 accumulation, bias/ReLU/reduce stay f32 (v5e-safe).
    x_bf16 = jax.random.normal(jax.random.PRNGKey(2), (B_big, F), jnp.bfloat16)
    out_bf16 = jax.block_until_ready(simple_model_old(x_bf16, w1, b1, w2, b2))
    assert jnp.allclose(out_bf16.astype(jnp.float32), ref(x_bf16),
                        atol=5e-2, rtol=5e-2)

    print("KERNEL_OK")
</pallas_src>

<mosaic_0001>
module attributes {stable_mosaic.version = 11 : i64} {
  func.func @mlp_kernel(%arg0: i32, %arg1: memref<8x32xf32, #tpu.memory_space<vmem>>, %arg2: memref<64x32xf32, #tpu.memory_space<vmem>>, %arg3: memref<64x1xf32, #tpu.memory_space<vmem>>, %arg4: memref<64x1xf32, #tpu.memory_space<vmem>>, %arg5: memref<1x1xf32, #tpu.memory_space<smem>>, %arg6: memref<1x8xf32, #tpu.memory_space<vmem>>) attributes {dimension_semantics = [#tpu.dimension_semantics<parallel>], iteration_bounds = array<i64: 1>, scalar_prefetch = 0 : i64, scratch_operands = 0 : i64, tpu.core_type = #tpu.core_type<tc>, window_params = [{transform_indices = @transform_0, window_bounds = array<i64: 8, 32>}, {pipeline_mode = #tpu.pipeline_mode<synchronous>, transform_indices = @transform_1, window_bounds = array<i64: 64, 32>}, {pipeline_mode = #tpu.pipeline_mode<synchronous>, transform_indices = @transform_2, window_bounds = array<i64: 64, 1>}, {pipeline_mode = #tpu.pipeline_mode<synchronous>, transform_indices = @transform_3, window_bounds = array<i64: 64, 1>}, {transform_indices = @transform_4, window_bounds = array<i64: 1, 1>}, {transform_indices = @transform_5, window_bounds = array<i64: 1, 8>}]} {
    %c0 = arith.constant 0 : index
    %c0_0 = arith.constant 0 : index
    %0 = vector.load %arg2[%c0, %c0_0] : memref<64x32xf32, #tpu.memory_space<vmem>>, vector<64x32xf32>
    %c0_1 = arith.constant 0 : index
    %c0_2 = arith.constant 0 : index
    %1 = vector.load %arg1[%c0_1, %c0_2] : memref<8x32xf32, #tpu.memory_space<vmem>>, vector<8x32xf32>
    %cst = arith.constant dense<0.000000e+00> : vector<64x8xf32>
    %2 = tpu.matmul %0, %1, %cst {dimension_numbers = #tpu.dot_dimension_numbers<[1], [1], [0], [0], [0, 0, 1, 0], [], []>} : vector<64x32xf32>, vector<8x32xf32>, vector<64x8xf32> -> vector<64x8xf32>
    %c0_3 = arith.constant 0 : index
    %c0_4 = arith.constant 0 : index
    %3 = vector.load %arg3[%c0_3, %c0_4] : memref<64x1xf32, #tpu.memory_space<vmem>>, vector<64x1xf32>
    %4 = vector.broadcast %3 : vector<64x1xf32> to vector<64x8xf32>
    %5 = arith.addf %2, %4 : vector<64x8xf32>
    %cst_5 = arith.constant 0.000000e+00 : f32
    %6 = vector.broadcast %cst_5 : f32 to vector<64x8xf32>
    %7 = arith.maximumf %5, %6 : vector<64x8xf32>
    %c0_6 = arith.constant 0 : index
    %c0_7 = arith.constant 0 : index
    %8 = vector.load %arg4[%c0_6, %c0_7] : memref<64x1xf32, #tpu.memory_space<vmem>>, vector<64x1xf32>
    %9 = vector.broadcast %8 : vector<64x1xf32> to vector<64x8xf32>
    %10 = arith.mulf %7, %9 : vector<64x8xf32>
    %cst_8 = arith.constant dense<0.000000e+00> : vector<8xf32>
    %11 = vector.multi_reduction <add>, %10, %cst_8 [0] : vector<64x8xf32> to vector<8xf32>
    %12 = vector.shape_cast %11 : vector<8xf32> to vector<1x8xf32>
    %c0_9 = arith.constant 0 : index
    %c0_10 = arith.constant 0 : index
    %13 = memref.load %arg5[%c0_9, %c0_10] : memref<1x1xf32, #tpu.memory_space<smem>>
    %14 = vector.broadcast %13 : f32 to vector<1x8xf32>
    %15 = arith.addf %12, %14 : vector<1x8xf32>
    %c0_11 = arith.constant 0 : index
    %c0_12 = arith.constant 0 : index
    %16 = vector.load %arg6[%c0_11, %c0_12] : memref<1x8xf32, #tpu.memory_space<vmem>>, vector<1x8xf32>
    tpu.vector_store %arg6[%c0_11, %c0_12], %15 {strides = array<i32>} : memref<1x8xf32, #tpu.memory_space<vmem>>, vector<1x8xf32>,
    return
  }
  func.func @transform_0(%arg0: i32) -> (i32, i32) {
    %c0_i32 = arith.constant 0 : i32
    %c0_i32_0 = arith.constant 0 : i32
    return %arg0, %c0_i32 : i32, i32
  }
  func.func @transform_1(%arg0: i32) -> (i32, i32) {
    %c0_i32 = arith.constant 0 : i32
    %c0_i32_0 = arith.constant 0 : i32
    %c0_i32_1 = arith.constant 0 : i32
    return %c0_i32, %c0_i32_0 : i32, i32
  }
  func.func @transform_2(%arg0: i32) -> (i32, i32) {
    %c0_i32 = arith.constant 0 : i32
    %c0_i32_0 = arith.constant 0 : i32
    %c0_i32_1 = arith.constant 0 : i32
    return %c0_i32, %c0_i32_0 : i32, i32
  }
  func.func @transform_3(%arg0: i32) -> (i32, i32) {
    %c0_i32 = arith.constant 0 : i32
    %c0_i32_0 = arith.constant 0 : i32
    %c0_i32_1 = arith.constant 0 : i32
    return %c0_i32, %c0_i32_0 : i32, i32
  }
  func.func @transform_4(%arg0: i32) -> (i32, i32) {
    %c0_i32 = arith.constant 0 : i32
    %c0_i32_0 = arith.constant 0 : i32
    %c0_i32_1 = arith.constant 0 : i32
    return %c0_i32, %c0_i32_0 : i32, i32
  }
  func.func @transform_5(%arg0: i32) -> (i32, i32) {
    %c0_i32 = arith.constant 0 : i32
    %c0_i32_0 = arith.constant 0 : i32
    return %c0_i32, %arg0 : i32, i32
  }
}

</mosaic_0001>

<bundles_post_ra>
// kernel: tpu_custom_call.1
= control target key start
LH: loop header
LB: loop body
LE: loop exit
PB: predicated region body
PF: predicated region fallthrough
CT: control target
= control target key end

     0   :  { %vm79_vm0 = vcmask 261120   ;;  %v298_v1 = vmov 0   ;;  %s431_s0 = inlined_call_operand.vmem [shape: f32[8,32], index: 0, kind: input, shape index: {}]   ;;  %s432_s1 = inlined_call_operand.vmem [shape: f32[64,32], index: 1, kind: input, shape index: {}]   ;;  %s433_s2 = inlined_call_operand.vmem [shape: f32[64,1], index: 2, kind: input, shape index: {}]   ;;  %s434_s3 = inlined_call_operand.vmem [shape: f32[64,1], index: 3, kind: input, shape index: {}]   ;;  %s435_s4 = inlined_call_operand.<no memory space> [shape: f32[1,1], index: 4, kind: input, shape index: {}]   ;;  %s436_s5 = inlined_call_operand.hbm [shape: f32[1,8], index: 5, kind: output, shape index: {}]  }
   0x1   :  { %v30_v0 = vld [vmem:[%s431_s0] sm:$0xff]  ;;  %271 = vset.pattern.permute.xlu2 %v298_v1  ;;  %270 = vset.pattern.permute.xlu1 %v298_v1  ;;  %v33_v3 = vld [vmem:[%s433_s2 + $0x10] sm:$0xff] }
   0x2   :  { %v35_v2 = vld [vmem:[%s433_s2 + $0x20] sm:$0xff]  ;;  %269 = vset.pattern.permute.xlu0 %v298_v1  ;;  %255 = vmatpush.xpose.msk.msra.mxu0 %vm79_vm0, %v30_v0  ;;  %v24_v6 = vld [vmem:[%s432_s1 + $0x10] sm:$0xff] }
   0x3   :  { %v31_v4 = vld [vmem:[%s433_s2] sm:$0xff]  ;;  %264 = vmatpush.xpose.msk.msra.mxu1 %vm79_vm0, %v30_v0  ;;  %265 = vmatpush.xpose.msk.msra.mxu2 %vm79_vm0, %v30_v0  ;;  %v28_v8 = vld [vmem:[%s432_s1 + $0x30] sm:$0xff] }
   0x4   :  { %v22_v5 = vld [vmem:[%s432_s1] sm:$0xff]  ;;  %61 = vperm.xlu2 %271, %v35_v2   ;;  %51 = vperm.xlu1 %270, %v33_v3  }
   0x5   :  { %v26_v7 = vld [vmem:[%s432_s1 + $0x20] sm:$0xff]  ;;  %41 = vperm.xlu0 %269, %v31_v4   ;;  %256 = vmatmul.msk.f32.vlgmr.msra.gmra.mxu0 %vm79_vm0, %v22_v5 }
   0x6   :  { %258 = vmatmul.msk.f32.vlgmr.msra.gmra.mxu1 %vm79_vm0, %v24_v6  ;;  %260 = vmatmul.msk.f32.vlgmr.msra.gmra.mxu2 %vm79_vm0, %v26_v7 }
   0x7   :  { %266 = vmatpush.xpose.msk.msra.mxu3 %vm79_vm0, %v30_v0 }
   0x8   :  { %11 = vsyncpa [#allocation4], 0  ;;  %v156_v9 = vld [vmem:[%s434_s3] sm:$0xff]  ;;  %v34_v10 = vld [vmem:[%s433_s2 + $0x18] sm:$0xff]  ;;  %vm212_vm1 = vcmask 64512   ;;  %s299_s15 = smov [#allocation3]  }
   0x9   :  { %v32_v11 = vld [vmem:[%s433_s2 + $0x8] sm:$0xff]  ;;  %v25_v13 = vld [vmem:[%s432_s1 + $0x18] sm:$0xff]  ;;  %v158_v17 = vld [vmem:[%s434_s3 + $0x10] sm:$0xff]  ;;  %s244_s16 = sshll.u32 %s299_s15, 4  ;;  %s246_s19 = sshll.u32 %s436_s5, 4  ;;  %vm237_vm2 = vcmask 57344   ;;  %s245_s16 = int_to_ptr.vmem [resolvable:$true] %s244_s16  ;;  %s247_s19 = int_to_ptr.hbm [resolvable:$true] %s246_s19 }
   0xa   :  { %262 = vmatmul.msk.f32.vlgmr.msra.gmra.mxu3 %vm79_vm0, %v28_v8  ;;  %v23_v12 = vld [vmem:[%s432_s1 + $0x8] sm:$0xff]  ;;  %v29_v15 = vld [vmem:[%s432_s1 + $0x38] sm:$0xff]  ;;  %v160_v19 = vld [vmem:[%s434_s3 + $0x20] sm:$0xff] }
   0xb   :  { %v27_v14 = vld [vmem:[%s432_s1 + $0x28] sm:$0xff]  ;;  %v37_v20 = vld [vmem:[%s433_s2 + $0x30] sm:$0xff]  ;;  %v159_v21 = vld [vmem:[%s434_s3 + $0x18] sm:$0xff] }
   0xc   :  { %166 = vperm.xlu2 %271, %v156_v9   ;;  %56 = vperm.xlu1 %270, %v34_v10   ;;  %v36_v16 = vld [vmem:[%s433_s2 + $0x28] sm:$0xff]  ;;  %v162_v22 = vld [vmem:[%s434_s3 + $0x30] sm:$0xff]  ;;  %v38_v24 = vld [vmem:[%s433_s2 + $0x38] sm:$0xff] }
   0xd   :  { %46 = vperm.xlu0 %269, %v32_v11   ;;  %257 = vmatmul.msk.f32.gmra.mxu0 %vm79_vm0, %v23_v12  ;;  %v157_v18 = vld [vmem:[%s434_s3 + $0x8] sm:$0xff]  ;;  %v163_v25 = vld [vmem:[%s434_s3 + $0x38] sm:$0xff] }
   0xe   :  { %259 = vmatmul.msk.f32.gmra.mxu1 %vm79_vm0, %v25_v13  ;;  %261 = vmatmul.msk.f32.gmra.mxu2 %vm79_vm0, %v27_v14  ;;  %v161_v23 = vld [vmem:[%s434_s3 + $0x28] sm:$0xff] }
  0x12   :  { %263 = vmatmul.msk.f32.gmra.mxu3 %vm79_vm0, %v29_v15 }
  0x14   :  { %66 = vperm.xlu2 %271, %v36_v16   ;;  %176 = vperm.xlu1 %270, %v158_v17  }
  0x15   :  { %171 = vperm.xlu0 %269, %v157_v18  }
  0x1c   :  { %186 = vperm.xlu2 %271, %v160_v19   ;;  %71 = vperm.xlu1 %270, %v37_v20  }
  0x1d   :  { %181 = vperm.xlu0 %269, %v159_v21  }
  0x24   :  { %196 = vperm.xlu2 %271, %v162_v22   ;;  %191 = vperm.xlu1 %270, %v161_v23  }
  0x25   :  { %76 = vperm.xlu0 %269, %v38_v24  }
  0x2d   :  { %201 = vperm.xlu0 %269, %v163_v25  }
  0x5e   :  { %v62_v26 = vpop.permute.xlu2 %61 }
  0x66   :  { %v167_v29 = vpop.permute.xlu2 %166 }
  0x6e   :  { %v67_v36 = vpop.permute.xlu2 %66 }
  0x76   :  { %v52_v27 = vpop.permute.xlu1 %51  ;;  %v187_v56 = vpop.permute.xlu2 %186 }
  0x77   :  { %v42_v28 = vpop.permute.xlu0 %41 }
  0x7e   :  { %v57_v30 = vpop.permute.xlu1 %56  ;;  %v197_v15 = vpop.permute.xlu2 %196 }
  0x7f   :  { %v47_v31 = vpop.permute.xlu0 %46 }
  0x82   :  { %v124_v32 = vpop.f32.mrf.mxu0 }
  0x83   :  { %v130_v33 = vpop.f32.mrf.mxu1  ;;  %v125_v34 = vadd.f32 %v124_v32, %v42_v28 }
  0x84   :  { %v131_v37 = vadd.f32 %v130_v33, %v52_v27 }
  0x85   :  { %v148_v39 = vmax.f32 %v125_v34, 0.0 }
  0x86   :  { %v177_v35 = vpop.permute.xlu1 %176  ;;  %v150_v42 = vmax.f32 %v131_v37, 0.0 }
  0x87   :  { %v172_v38 = vpop.permute.xlu0 %171  ;;  %v204_v47 = vmul.f32 %v167_v29, %v148_v39 }
  0x88   :  { %v206_v52 = vmul.f32 %v177_v35, %v150_v42 }
  0x89   :  { %v136_v40 = vpop.f32.mrf.mxu2  ;;  %v213_v57 = vsel %vm212_vm1, %v204_v47, 0.0 }
  0x8a   :  { %v127_v41 = vpop.f32.mrf.mxu0  ;;  %v137_v45 = vadd.f32 %v136_v40, %v62_v26  ;;  %v216_v63 = vsel %vm212_vm1, %v206_v52, 0.0 }
  0x8b   :  { %v128_v43 = vadd.f32 %v127_v41, %v47_v31  ;;  %v133_v44 = vpop.f32.mrf.mxu1 }
  0x8c   :  { %v134_v46 = vadd.f32 %v133_v44, %v57_v30  ;;  %v152_v55 = vmax.f32 %v137_v45, 0.0  ;;  %v235_v30 = vstv %s435_s4 }
  0x8d   :  { %v149_v48 = vmax.f32 %v128_v43, 0.0  ;;  %v142_v49 = vpop.f32.mrf.mxu3 }
  0x8e   :  { %v151_v50 = vmax.f32 %v134_v46, 0.0  ;;  %v72_v51 = vpop.permute.xlu1 %71  ;;  %v208_v0 = vmul.f32 %v187_v56, %v152_v55 }
  0x8f   :  { %v205_v53 = vmul.f32 %v172_v38, %v149_v48  ;;  %v182_v54 = vpop.permute.xlu0 %181  ;;  %v143_v2 = vadd.f32 %v142_v49, %v72_v51 }
  0x90   :  { %v207_v59 = vmul.f32 %v182_v54, %v151_v50  ;;  %v220_v10 = vsel %vm212_vm1, %v208_v0, 0.0 }
  0x91   :  { %v214_v58 = vsel %vm212_vm1, %v205_v53, 0.0  ;;  %v139_v60 = vpop.f32.mrf.mxu2  ;;  %v154_v11 = vmax.f32 %v143_v2, 0.0 }
  0x92   :  { %v215_v61 = vadd.f32 %v214_v58, %v213_v57  ;;  %v140_v62 = vadd.f32 %v139_v60, %v67_v36  ;;  %v218_v4 = vsel %vm212_vm1, %v207_v59, 0.0 }
  0x93   :  { %v210_v16 = vmul.f32 %v197_v15, %v154_v11 }
  0x94   :  { %v217_v1 = vadd.f32 %v216_v63, %v215_v61  ;;  %v153_v3 = vmax.f32 %v140_v62, 0.0 }
  0x95   :  { %v145_v9 = vpop.f32.mrf.mxu3  ;;  %v224_v20 = vsel %vm212_vm1, %v210_v16, 0.0 }
  0x96   :  { %v219_v5 = vadd.f32 %v218_v4, %v217_v1  ;;  %v192_v6 = vpop.permute.xlu1 %191 }
  0x97   :  { %v209_v7 = vmul.f32 %v192_v6, %v153_v3  ;;  %v77_v8 = vpop.permute.xlu0 %76 }
  0x98   :  { %v221_v12 = vadd.f32 %v220_v10, %v219_v5  ;;  %v146_v14 = vadd.f32 %v145_v9, %v77_v8 }
  0x99   :  { %v222_v13 = vsel %vm212_vm1, %v209_v7, 0.0 }
  0x9a   :  { %v223_v17 = vadd.f32 %v222_v13, %v221_v12  ;;  %v155_v18 = vmax.f32 %v146_v14, 0.0 }
  0x9c   :  { %v225_v22 = vadd.f32 %v224_v20, %v223_v17 }
  0x9f   :  { %v202_v19 = vpop.permute.xlu0 %201 }
  0xa0   :  { %v211_v21 = vmul.f32 %v202_v19, %v155_v18 }
  0xa2   :  { %v226_v23 = vsel %vm212_vm1, %v211_v21, 0.0 }
  0xa3   :  { %v227_v24 = vadd.f32 %v226_v23, %v225_v22 }
  0xa5   :  { %v228_v25 = vrot.slane %v227_v24, 4 }
  0xa7   :  { %v229_v26 = vadd.f32 %v228_v25, %v227_v24 }
  0xa9   :  { %v230_v27 = vrot.slane %v229_v26, 2 }
  0xab   :  { %v231_v28 = vadd.f32 %v230_v27, %v229_v26 }
  0xad   :  { %v232_v29 = vrot.slane %v231_v28, 1 }
  0xaf   :  { %v233_v31 = vadd.f32 %v232_v29, %v231_v28 }
  0xb1   :  { %v236_v32 = vadd.f32 %v235_v30, %v233_v31 }
  0xb3   :  { %238 = vst.msk [vmem:[#allocation3] sm:$0x1] %vm237_vm2, %v236_v32 }
  0xb4   :  { %249 = dma.vmem_to_hbm [thread:$0]  %s245_s16, 16, %s247_s19, [#allocation4]  }
  0xb5   :  { %296 = dma.done.wait [#allocation4], 16  }
  0xb6   :  { %297 = vsyncadd [#allocation4], 4294967280 }
  0xb7   :  { %254 = vsyncpa [#allocation4], 1 }

</bundles_post_ra>
